<compile_context>
chip_gen: v6e
topology: v6e:2x2x1
jax: 0.10.0
libtpu: 0.0.40
codegen_flags: <defaults>
</compile_context>

<pallas_src>
import functools

import jax
import jax.numpy as jnp
from jax.experimental import pallas as pl
from jax.experimental.pallas import tpu as pltpu


def _round_up(x, m):
    return (x + m - 1) // m * m


def _vmem_capacity_bytes():
    try:
        cap = int(pltpu.get_tpu_info().vmem_capacity_bytes)
        if cap > 0:
            return cap
    except Exception:
        pass
    return 64 * 1024 * 1024   # conservative default (v7x per-TensorCore VMEM)


def _shifting_gate_kernel(xe_ref, xf_ref, whe_ref, wfm_ref, vec_ref, o_ref,
                          *, beta_shift, ln_eps, d1, d1p, matmul_dtype):
    xe_raw = xe_ref[...]                     # streamed dtype (f32 in the test)
    xe_mm = xe_raw.astype(matmul_dtype)      # matmul operand (bf16 -> full MXU)
    xf_mm = xf_ref[...]                      # already in matmul dtype

    vecs = vec_ref[...].astype(jnp.float32)  # (8, d1p): bh, bm, gamma, beta, 0...
    b_h, b_m = vecs[0:1, :], vecs[1:2, :]
    gamma, beta = vecs[2:3, :], vecs[3:4, :]

    # W_h(cat(text_embed, text_fused)) == xe @ W_he + xf @ W_hf + b_h
    # W_hf and W_m live fused in one weight array; static ref slices are
    # zero-cost views and avoid a (TM, 2*d1p) live f32 intermediate.
    wh = (jnp.dot(xe_mm, whe_ref[...], preferred_element_type=jnp.float32)
          + jnp.dot(xf_mm, wfm_ref[:, :d1p], preferred_element_type=jnp.float32)
          + b_h)
    weight_h = jnp.maximum(wh, 0.0)                                   # ReLU
    wm = jnp.dot(xf_mm, wfm_ref[:, d1p:], preferred_element_type=jnp.float32) + b_m
    h_m = weight_h * wm                      # (TM, d1p); padded cols stay 0

    xe = xe_raw.astype(jnp.float32)

    # L2 norms over the feature dim (padded columns are exactly zero).
    em_norm = jnp.sqrt(jnp.sum(xe * xe, axis=-1, keepdims=True))      # (TM, 1)
    hm_norm = jnp.sqrt(jnp.sum(h_m * h_m, axis=-1, keepdims=True))    # (TM, 1)
    hm_norm = jnp.where(hm_norm == 0.0, jnp.ones_like(hm_norm), hm_norm)

    inv_hm = pl.reciprocal(hm_norm + jnp.float32(1e-6), approx=True)  # EUP slot
    thresh_hold = em_norm * inv_hm * jnp.float32(beta_shift)
    alpha = jnp.minimum(thresh_hold, 1.0)                             # (TM, 1)

    fused = alpha * h_m + xe                 # padded cols stay 0

    # LayerNorm over the REAL feature count d1 (PyTorch default eps, affine).
    inv_d = jnp.float32(1.0 / d1)
    mean = jnp.sum(fused, axis=-1, keepdims=True) * inv_d
    centered = fused - mean
    if d1p != d1:
        col = jax.lax.broadcasted_iota(jnp.int32, (1, d1p), 1)
        centered_m = jnp.where(col < d1, centered, 0.0)
    else:
        centered_m = centered
    var = jnp.sum(centered_m * centered_m, axis=-1, keepdims=True) * inv_d
    inv_std = jax.lax.rsqrt(var + jnp.float32(ln_eps))
    # gamma/beta padded columns are zero -> padded output columns are zero.
    normed = centered * inv_std * gamma + beta

    # TODO(synk): dropout omitted (eval-mode identity); training-mode dropout
    # would use pltpu.prng_seed + pltpu.prng_random_bits.
    o_ref[...] = normed.astype(o_ref.dtype)


def preprocess_params(params, d1, d2, matmul_dtype=jnp.bfloat16):
    """One-time weight transpose / fuse / pad / cast (reuse across steps)."""
    d1p = _round_up(d1, 128)
    d2p = _round_up(d2, 128)

    W_h = jnp.asarray(params["W_h_weight"])     # (d1, d1 + d2)  PyTorch layout
    whe = jnp.transpose(W_h[:, :d1])            # (d1, d1)
    whf = jnp.transpose(W_h[:, d1:])            # (d2, d1)
    wm = jnp.transpose(jnp.asarray(params["W_m_weight"]))   # (d2, d1)

    def pad2(x, r, c):
        return jnp.pad(x, ((0, r - x.shape[0]), (0, c - x.shape[1])))

    whe_p = pad2(whe, d1p, d1p).astype(matmul_dtype)
    wfm_p = jnp.concatenate([pad2(whf, d2p, d1p), pad2(wm, d2p, d1p)],
                            axis=1).astype(matmul_dtype)     # (d2p, 2*d1p)

    def pad_row(v):
        v = jnp.asarray(v, jnp.float32).reshape(1, -1)
        return jnp.pad(v, ((0, 0), (0, d1p - d1)))

    # Merge bias_h / bias_m / gamma / beta into a single (8, d1p) array.
    vecs = jnp.concatenate([pad_row(params["W_h_bias"]),
                            pad_row(params["W_m_bias"]),
                            pad_row(params["ln_weight"]),
                            pad_row(params["ln_bias"]),
                            jnp.zeros((4, d1p), jnp.float32)], axis=0)

    return {"whe": whe_p, "wfm": wfm_p, "vecs": vecs,
            "d1": d1, "d2": d2, "d1p": d1p, "d2p": d2p,
            "matmul_dtype": matmul_dtype}


def shifting_gate_forward(text_embed, text_fused, pp,
                          *, beta_shift=1.0, ln_eps=1e-5, tile_rows=1024):
    """text_embed: (..., D1), text_fused: (..., D2) -> (..., D1)."""
    d1, d2, d1p, d2p = pp["d1"], pp["d2"], pp["d1p"], pp["d2p"]
    mm_dtype = pp["matmul_dtype"]
    lead_shape = text_embed.shape[:-1]
    n = 1
    for s in lead_shape:
        n *= s

    xe = text_embed.reshape(n, d1)
    xf = text_fused.reshape(n, d2).astype(mm_dtype)   # only used in matmuls

    # Zero-pad feature dims to lane-dense multiples of 128 (no-op if aligned).
    if d1p != d1:
        xe = jnp.pad(xe, ((0, 0), (0, d1p - d1)))
    if d2p != d2:
        xf = jnp.pad(xf, ((0, 0), (0, d2p - d2)))

    xe_sz = jnp.dtype(xe.dtype).itemsize
    xf_sz = jnp.dtype(xf.dtype).itemsize
    out_sz = jnp.dtype(text_embed.dtype).itemsize
    w_sz = jnp.dtype(mm_dtype).itemsize

    # Per-generation VMEM budget.
    vmem_cap = _vmem_capacity_bytes()                       # 128 MiB v5e/v6e, 64 MiB v7x
    vmem_limit = min(vmem_cap * 3 // 4, vmem_cap - (8 << 20))

    # Correct VMEM accounting: single-buffered weights + double-buffered row
    # streams + f32 intermediates (~6 live (TM, d1p) temporaries).
    weight_bytes = (d1p * d1p + 2 * d1p * d2p) * w_sz + 8 * d1p * 4
    per_row = 2 * (d1p * xe_sz + d2p * xf_sz + d1p * out_sz) + 6 * d1p * 4
    row_budget = max(0, vmem_limit - weight_bytes - (2 << 20))
    rows_cap = max(8, (row_budget // per_row) // 8 * 8)

    # >= 2 grid steps so both v7x TensorCores get work; never exceed the rows.
    two_step_cap = max(8, _round_up(pl.cdiv(n, 2), 8))
    tile_rows = max(8, min(tile_rows, rows_cap, two_step_cap, _round_up(n, 8)))

    # No row padding: ragged last block is masked by Pallas; garbage rows only
    # produce discarded outputs (all math is per-row).
    grid = (pl.cdiv(n, tile_rows),)

    kernel = functools.partial(_shifting_gate_kernel,
                               beta_shift=float(beta_shift),
                               ln_eps=float(ln_eps), d1=d1, d1p=d1p,
                               matmul_dtype=mm_dtype)

    cost = pl.CostEstimate(
        flops=int(2 * n * (d1p * d1p + 2 * d1p * d2p)),
        transcendentals=int(4 * n),
        bytes_accessed=int(n * (d1p * xe_sz + d2p * xf_sz + d1p * out_sz)
                           + weight_bytes),
    )

    # Constant-index operands as whole-array VMEM residents: fetched once,
    # single-buffered (half the weight VMEM vs. double-buffered blocked specs).
    vmem_whole = pl.BlockSpec(memory_space=pltpu.MemorySpace.VMEM)

    out = pl.pallas_call(
        kernel,
        out_shape=jax.ShapeDtypeStruct((n, d1p), text_embed.dtype),
        grid_spec=pltpu.PrefetchScalarGridSpec(
            num_scalar_prefetch=0,
            grid=grid,
            in_specs=[
                pl.BlockSpec((tile_rows, d1p), lambda i: (i, 0)),  # text_embed rows
                pl.BlockSpec((tile_rows, d2p), lambda i: (i, 0)),  # text_fused rows
                vmem_whole,    # W_he^T              (d1p, d1p)
                vmem_whole,    # [W_hf^T | W_m^T]    (d2p, 2*d1p)
                vmem_whole,    # bh/bm/gamma/beta    (8, d1p)
            ],
            out_specs=pl.BlockSpec((tile_rows, d1p), lambda i: (i, 0)),
        ),
        compiler_params=pltpu.CompilerParams(
            dimension_semantics=("parallel",),
            vmem_limit_bytes=int(vmem_limit)),
        cost_estimate=cost,
    )(xe, xf, pp["whe"], pp["wfm"], pp["vecs"])

    if d1p != d1:
        out = out[:, :d1]
    return out.reshape(*lead_shape, d1)


def init_params(key, d1, d2, dtype=jnp.float32):
    k1, k2, k3, k4 = jax.random.split(key, 4)
    s_h = 1.0 / jnp.sqrt(jnp.float32(d1 + d2))
    s_m = 1.0 / jnp.sqrt(jnp.float32(d2))
    return {
        "W_h_weight": jax.random.uniform(k1, (d1, d1 + d2), dtype, -s_h, s_h),
        "W_h_bias":   jax.random.uniform(k2, (d1,), dtype, -s_h, s_h),
        "W_m_weight": jax.random.uniform(k3, (d1, d2), dtype, -s_m, s_m),
        "W_m_bias":   jax.random.uniform(k4, (d1,), dtype, -s_m, s_m),
        "ln_weight":  jnp.ones((d1,), dtype),
        "ln_bias":    jnp.zeros((d1,), dtype),
    }


def _reference(text_embed, text_fused, params, beta_shift=1.0):
    # Pure-JAX reference mirroring the PyTorch forward (eval mode).
    eps = 1e-6
    cat = jnp.concatenate([text_embed, text_fused], axis=-1)
    weight_h = jax.nn.relu(cat @ params["W_h_weight"].T + params["W_h_bias"])
    h_m = weight_h * (text_fused @ params["W_m_weight"].T + params["W_m_bias"])
    em_norm = jnp.linalg.norm(text_embed, axis=-1)
    hm_norm = jnp.linalg.norm(h_m, axis=-1)
    hm_norm = jnp.where(hm_norm == 0, jnp.ones_like(hm_norm), hm_norm)
    thresh = em_norm / (hm_norm + eps) * beta_shift
    alpha = jnp.minimum(thresh, 1.0)[..., None]
    fused = alpha * h_m + text_embed
    mean = fused.mean(-1, keepdims=True)
    var = ((fused - mean) ** 2).mean(-1, keepdims=True)
    return ((fused - mean) / jnp.sqrt(var + 1e-5)) * params["ln_weight"] + params["ln_bias"]


if __name__ == "__main__":
    B, S = 2, 8           # batch, sequence
    D1, D2 = 32, 32       # embed_dim_1, embed_dim_2

    key = jax.random.PRNGKey(0)
    k_e, k_f, k_p = jax.random.split(key, 3)
    text_embed = jax.random.normal(k_e, (B, S, D1), jnp.float32)
    text_fused = jax.random.normal(k_f, (B, S, D2), jnp.float32)
    params = init_params(k_p, D1, D2)

    ref = _reference(text_embed, text_fused, params, beta_shift=1.0)

    # Path 1: f32 matmul operands (tight check of the kernel math).
    pp32 = preprocess_params(params, D1, D2, matmul_dtype=jnp.float32)
    out32 = jax.block_until_ready(
        shifting_gate_forward(text_embed, text_fused, pp32, beta_shift=1.0))
    assert out32.shape == (B, S, D1)
    assert jnp.allclose(out32, ref, atol=1e-2, rtol=1e-2), "f32 path mismatch"

    # Path 2: bf16 matmul operands (recommended on v5e/v6e/v7x) - looser tol.
    ppbf = preprocess_params(params, D1, D2, matmul_dtype=jnp.bfloat16)
    outbf = jax.block_until_ready(
        shifting_gate_forward(text_embed, text_fused, ppbf, beta_shift=1.0))
    assert outbf.shape == (B, S, D1)
    assert jnp.allclose(outbf, ref, atol=6e-2, rtol=6e-2), "bf16 path mismatch"

    print("KERNEL_OK")
</pallas_src>

<mosaic_0001>
module attributes {stable_mosaic.version = 11 : i64} {
  func.func @_shifting_gate_kernel(%arg0: i32, %arg1: memref<8x128xf32, #tpu.memory_space<vmem>>, %arg2: memref<8x128xf32, #tpu.memory_space<vmem>>, %arg3: memref<128x128xf32, #tpu.memory_space<vmem>>, %arg4: memref<128x256xf32, #tpu.memory_space<vmem>>, %arg5: memref<8x128xf32, #tpu.memory_space<vmem>>, %arg6: memref<8x128xf32, #tpu.memory_space<vmem>>) attributes {dimension_semantics = [#tpu.dimension_semantics<parallel>], iteration_bounds = array<i64: 2>, scalar_prefetch = 0 : i64, scratch_operands = 0 : i64, tpu.core_type = #tpu.core_type<tc>, window_params = [{transform_indices = @transform_0, window_bounds = array<i64: 8, 128>}, {transform_indices = @transform_1, window_bounds = array<i64: 8, 128>}, {pipeline_mode = #tpu.pipeline_mode<synchronous>, transform_indices = @transform_2, window_bounds = array<i64: 128, 128>}, {pipeline_mode = #tpu.pipeline_mode<synchronous>, transform_indices = @transform_3, window_bounds = array<i64: 128, 256>}, {pipeline_mode = #tpu.pipeline_mode<synchronous>, transform_indices = @transform_4, window_bounds = array<i64: 8, 128>}, {transform_indices = @transform_5, window_bounds = array<i64: 8, 128>}]} {
    %c0 = arith.constant 0 : index
    %c0_0 = arith.constant 0 : index
    %0 = vector.load %arg1[%c0, %c0_0] : memref<8x128xf32, #tpu.memory_space<vmem>>, vector<8x128xf32>
    %c0_1 = arith.constant 0 : index
    %c0_2 = arith.constant 0 : index
    %1 = vector.load %arg2[%c0_1, %c0_2] : memref<8x128xf32, #tpu.memory_space<vmem>>, vector<8x128xf32>
    %c0_3 = arith.constant 0 : index
    %c0_4 = arith.constant 0 : index
    %2 = vector.load %arg5[%c0_3, %c0_4] : memref<8x128xf32, #tpu.memory_space<vmem>>, vector<8x128xf32>
    %3 = vector.extract_strided_slice %2 {offsets = [0, 0], sizes = [1, 128], strides = [1, 1]} : vector<8x128xf32> to vector<1x128xf32>
    %4 = vector.extract_strided_slice %2 {offsets = [1, 0], sizes = [1, 128], strides = [1, 1]} : vector<8x128xf32> to vector<1x128xf32>
    %5 = vector.extract_strided_slice %2 {offsets = [2, 0], sizes = [1, 128], strides = [1, 1]} : vector<8x128xf32> to vector<1x128xf32>
    %6 = vector.extract_strided_slice %2 {offsets = [3, 0], sizes = [1, 128], strides = [1, 1]} : vector<8x128xf32> to vector<1x128xf32>
    %c0_5 = arith.constant 0 : index
    %c0_6 = arith.constant 0 : index
    %7 = vector.load %arg3[%c0_5, %c0_6] : memref<128x128xf32, #tpu.memory_space<vmem>>, vector<128x128xf32>
    %cst = arith.constant dense<0.000000e+00> : vector<8x128xf32>
    %8 = tpu.matmul %0, %7, %cst {dimension_numbers = #tpu.dot_dimension_numbers<[1], [0], [0], [1], [0, 0, 1, 1], [], []>} : vector<8x128xf32>, vector<128x128xf32>, vector<8x128xf32> -> vector<8x128xf32>
    %c0_7 = arith.constant 0 : index
    %c0_8 = arith.constant 0 : index
    %9 = vector.load %arg4[%c0_7, %c0_8] : memref<128x256xf32, #tpu.memory_space<vmem>>, vector<128x128xf32>
    %cst_9 = arith.constant dense<0.000000e+00> : vector<8x128xf32>
    %10 = tpu.matmul %1, %9, %cst_9 {dimension_numbers = #tpu.dot_dimension_numbers<[1], [0], [0], [1], [0, 0, 1, 1], [], []>} : vector<8x128xf32>, vector<128x128xf32>, vector<8x128xf32> -> vector<8x128xf32>
    %11 = arith.addf %8, %10 : vector<8x128xf32>
    %12 = vector.broadcast %3 : vector<1x128xf32> to vector<8x128xf32>
    %13 = arith.addf %11, %12 : vector<8x128xf32>
    %cst_10 = arith.constant 0.000000e+00 : f32
    %14 = vector.broadcast %cst_10 : f32 to vector<8x128xf32>
    %15 = arith.maximumf %13, %14 : vector<8x128xf32>
    %c0_11 = arith.constant 0 : index
    %c128 = arith.constant 128 : index
    %16 = vector.load %arg4[%c0_11, %c128] : memref<128x256xf32, #tpu.memory_space<vmem>>, vector<128x128xf32>
    %cst_12 = arith.constant dense<0.000000e+00> : vector<8x128xf32>
    %17 = tpu.matmul %1, %16, %cst_12 {dimension_numbers = #tpu.dot_dimension_numbers<[1], [0], [0], [1], [0, 0, 1, 1], [], []>} : vector<8x128xf32>, vector<128x128xf32>, vector<8x128xf32> -> vector<8x128xf32>
    %18 = vector.broadcast %4 : vector<1x128xf32> to vector<8x128xf32>
    %19 = arith.addf %17, %18 : vector<8x128xf32>
    %20 = arith.mulf %15, %19 : vector<8x128xf32>
    %21 = arith.mulf %0, %0 : vector<8x128xf32>
    %cst_13 = arith.constant dense<0.000000e+00> : vector<8xf32>
    %22 = vector.multi_reduction <add>, %21, %cst_13 [1] : vector<8x128xf32> to vector<8xf32>
    %23 = vector.shape_cast %22 : vector<8xf32> to vector<8x1xf32>
    %24 = math.sqrt %23 : vector<8x1xf32>
    %25 = arith.mulf %20, %20 : vector<8x128xf32>
    %cst_14 = arith.constant dense<0.000000e+00> : vector<8xf32>
    %26 = vector.multi_reduction <add>, %25, %cst_14 [1] : vector<8x128xf32> to vector<8xf32>
    %27 = vector.shape_cast %26 : vector<8xf32> to vector<8x1xf32>
    %28 = math.sqrt %27 : vector<8x1xf32>
    %cst_15 = arith.constant 0.000000e+00 : f32
    %29 = vector.broadcast %cst_15 : f32 to vector<8x1xf32>
    %30 = arith.cmpf oeq, %28, %29 : vector<8x1xf32>
    %cst_16 = arith.constant 1.000000e+00 : f32
    %31 = vector.broadcast %cst_16 : f32 to vector<8x1xf32>
    %32 = arith.select %30, %31, %28 : vector<8x1xi1>, vector<8x1xf32>
    %cst_17 = arith.constant 9.99999997E-7 : f32
    %33 = vector.broadcast %cst_17 : f32 to vector<8x1xf32>
    %34 = arith.addf %32, %33 : vector<8x1xf32>
    %35 = tpu.reciprocal %34 {approx = true} : vector<8x1xf32> -> vector<8x1xf32>
    %36 = arith.mulf %24, %35 : vector<8x1xf32>
    %cst_18 = arith.constant 1.000000e+00 : f32
    %37 = vector.broadcast %cst_18 : f32 to vector<8x1xf32>
    %38 = arith.mulf %36, %37 : vector<8x1xf32>
    %cst_19 = arith.constant 1.000000e+00 : f32
    %39 = vector.broadcast %cst_19 : f32 to vector<8x1xf32>
    %40 = arith.minimumf %38, %39 : vector<8x1xf32>
    %41 = vector.broadcast %40 : vector<8x1xf32> to vector<8x128xf32>
    %42 = arith.mulf %41, %20 : vector<8x128xf32>
    %43 = arith.addf %42, %0 : vector<8x128xf32>
    %cst_20 = arith.constant dense<0.000000e+00> : vector<8xf32>
    %44 = vector.multi_reduction <add>, %43, %cst_20 [1] : vector<8x128xf32> to vector<8xf32>
    %45 = vector.shape_cast %44 : vector<8xf32> to vector<8x1xf32>
    %cst_21 = arith.constant 3.125000e-02 : f32
    %46 = vector.broadcast %cst_21 : f32 to vector<8x1xf32>
    %47 = arith.mulf %45, %46 : vector<8x1xf32>
    %48 = vector.broadcast %47 : vector<8x1xf32> to vector<8x128xf32>
    %49 = arith.subf %43, %48 : vector<8x128xf32>
    %50 = tpu.iota {dimensions = array<i32: 1>} : vector<1x128xi32>
    %c32_i32 = arith.constant 32 : i32
    %51 = vector.broadcast %c32_i32 : i32 to vector<1x128xi32>
    %52 = arith.cmpi slt, %50, %51 : vector<1x128xi32>
    %cst_22 = arith.constant 0.000000e+00 : f32
    %53 = vector.shape_cast %52 : vector<1x128xi1> to vector<1x128xi1>
    %54 = vector.broadcast %53 : vector<1x128xi1> to vector<8x128xi1>
    %55 = vector.broadcast %cst_22 : f32 to vector<8x128xf32>
    %56 = arith.select %54, %49, %55 : vector<8x128xi1>, vector<8x128xf32>
    %57 = arith.mulf %56, %56 : vector<8x128xf32>
    %cst_23 = arith.constant dense<0.000000e+00> : vector<8xf32>
    %58 = vector.multi_reduction <add>, %57, %cst_23 [1] : vector<8x128xf32> to vector<8xf32>
    %59 = vector.shape_cast %58 : vector<8xf32> to vector<8x1xf32>
    %cst_24 = arith.constant 3.125000e-02 : f32
    %60 = vector.broadcast %cst_24 : f32 to vector<8x1xf32>
    %61 = arith.mulf %59, %60 : vector<8x1xf32>
    %cst_25 = arith.constant 9.99999974E-6 : f32
    %62 = vector.broadcast %cst_25 : f32 to vector<8x1xf32>
    %63 = arith.addf %61, %62 : vector<8x1xf32>
    %64 = math.rsqrt %63 : vector<8x1xf32>
    %65 = vector.broadcast %64 : vector<8x1xf32> to vector<8x128xf32>
    %66 = arith.mulf %49, %65 : vector<8x128xf32>
    %67 = vector.broadcast %5 : vector<1x128xf32> to vector<8x128xf32>
    %68 = arith.mulf %66, %67 : vector<8x128xf32>
    %69 = vector.broadcast %6 : vector<1x128xf32> to vector<8x128xf32>
    %70 = arith.addf %68, %69 : vector<8x128xf32>
    %c0_26 = arith.constant 0 : index
    %c0_27 = arith.constant 0 : index
    %71 = vector.load %arg6[%c0_26, %c0_27] : memref<8x128xf32, #tpu.memory_space<vmem>>, vector<8x128xf32>
    tpu.vector_store %arg6[%c0_26, %c0_27], %70 {strides = array<i32>} : memref<8x128xf32, #tpu.memory_space<vmem>>, vector<8x128xf32>,
    return
  }
  func.func @transform_0(%arg0: i32) -> (i32, i32) {
    %c0_i32 = arith.constant 0 : i32
    %c0_i32_0 = arith.constant 0 : i32
    return %arg0, %c0_i32 : i32, i32
  }
  func.func @transform_1(%arg0: i32) -> (i32, i32) {
    %c0_i32 = arith.constant 0 : i32
    %c0_i32_0 = arith.constant 0 : i32
    return %arg0, %c0_i32 : i32, i32
  }
  func.func @transform_2(%arg0: i32) -> (i32, i32) {
    %c0_i32 = arith.constant 0 : i32
    %c0_i32_0 = arith.constant 0 : i32
    %c0_i32_1 = arith.constant 0 : i32
    return %c0_i32, %c0_i32_0 : i32, i32
  }
  func.func @transform_3(%arg0: i32) -> (i32, i32) {
    %c0_i32 = arith.constant 0 : i32
    %c0_i32_0 = arith.constant 0 : i32
    %c0_i32_1 = arith.constant 0 : i32
    return %c0_i32, %c0_i32_0 : i32, i32
  }
  func.func @transform_4(%arg0: i32) -> (i32, i32) {
    %c0_i32 = arith.constant 0 : i32
    %c0_i32_0 = arith.constant 0 : i32
    %c0_i32_1 = arith.constant 0 : i32
    return %c0_i32, %c0_i32_0 : i32, i32
  }
  func.func @transform_5(%arg0: i32) -> (i32, i32) {
    %c0_i32 = arith.constant 0 : i32
    %c0_i32_0 = arith.constant 0 : i32
    return %arg0, %c0_i32 : i32, i32
  }
}

</mosaic_0001>

<bundles_post_ra>
// kernel: tpu_custom_call.1
= control target key start
LH: loop header
LB: loop body
LE: loop exit
PB: predicated region body
PF: predicated region fallthrough
CT: control target
= control target key end

     0   :  { %s1599_s0 = inlined_call_operand.hbm [shape: f32[16,128], index: 0, kind: input, shape index: {}]   ;;  %s1600_s1 = inlined_call_operand.hbm [shape: f32[16,128], index: 1, kind: input, shape index: {}]   ;;  %s1601_s2 = inlined_call_operand.hbm [shape: f32[128,128], index: 2, kind: input, shape index: {}]   ;;  %s1602_s3 = inlined_call_operand.hbm [shape: f32[128,256], index: 3, kind: input, shape index: {}]   ;;  %s1603_s4 = inlined_call_operand.hbm [shape: f32[8,128], index: 4, kind: input, shape index: {}]   ;;  %s1604_s5 = inlined_call_operand.hbm [shape: f32[16,128], index: 5, kind: output, shape index: {}]  }
   0x1   :  { %1609 = sst [smem:[#allocation17_spill]] %s1601_s2 }
   0x2   :  { %1610 = sst [smem:[#allocation18_spill]] %s1602_s3 }
   0x3   :  { %10 = vsyncpa [#allocation3], 0 }
   0x4   :  { %12 = vsyncpa [#allocation3 + $0x1], 0 }
   0x5   :  { %13 = vsyncpa [#allocation6], 0 }
   0x6   :  { %15 = vsyncpa [#allocation6 + $0x1], 0 }
   0x7   :  { %16 = vsyncpa [#allocation9], 0 }
   0x8   :  { %17 = vsyncpa [#allocation4], 0 }
   0x9   :  { %19 = vsyncpa [#allocation4 + $0x1], 0  ;;  %s1308_s18 = smov 0   ;;  %s1310_s19 = smov 0  }
   0xa   :  { %s1312_s20 = smov 0   ;;  %s1314_s21 = smov 0  }
   0xb LB: > { %s1329_s22 = sadd.s32 4294967295, %s1264_s21   ;;  %s781_s23 = sadd.s32 4294967294, %s1264_s21   ;;  %s1264_s21 = sphi %s1314_s21, %s1632_s21   ;;  %s1260_s20 = sphi %s1312_s20, %s1631_s20   ;;  %s1256_s19 = sphi %s1310_s19, %s1630_s19   ;;  %s1252_s18 = sphi %s1308_s18, %s1629_s18  }
   0xc   : > { %p45_p0 = scmp.ne.s32.totalorder %s1256_s19, %s1252_s18  ;;  %p1605_p1 = scmp.eq.s32.totalorder %s1329_s22, 0 }
   0xd   : > { %p164_p3 = scmp.eq.s32.totalorder %s781_s23, 1  ;;  %p782_p5 = scmp.ge.s32.totalorder %s1264_s21, 1 }
   0xe   : > { %p1338_p4 = por %p1605_p1, %p45_p0  ;;  %p171_p7 = scmp.lt.s32.totalorder %s1264_s21, 3 }
   0xf   : > { %p1343_p6 = por %p164_p3, %p45_p0  ;;  %s1266_s27 = smov [#allocation7]  }
  0x10   : > { %s1611_s24 = scalar_select %p1338_p4, 1, 0 }
  0x11   : > { %s1612_s25 = scalar_select %p1343_p6, 1, 0 }
  0x12   : > { %p1348_p8 = pnand %p782_p5, %p171_p7  ;;  %s183_s28 = sshll.u32 %s1266_s27, 4  ;;  %s184_s28 = int_to_ptr.vmem [resolvable:$true] %s183_s28 }
  0x13   : > { %s1267_s30 = smov [#allocation8]   ;;  %s1065_s7 = scalar_lea.vmem %s184_s28, 2048 }
  0x14   : > { %s1613_s26 = scalar_select %p1348_p8, 1, 0 }
  0x15   : > { %p976_p9 = pneg %p1348_p8  ;;  %s196_s6 = sshll.u32 %s1267_s30, 4  ;;  %s197_s6 = int_to_ptr.vmem [resolvable:$true] %s196_s6 }
  0x16   : > { %p1066_p13 = scmp.ne.s32.totalorder %s184_s28, %s1065_s7  ;;  %p1073_p5 = scmp.lt.s32.totalorder %s184_s28, %s184_s28 }
  0x17   : > { %p1357_p11 = pnand %p976_p9, %p1605_p1  ;;  %p1074_p7 = scmp.lt.s32.totalorder %s1065_s7, %s1065_s7 }
  0x19   : > { %p1056_p12 = pneg %p1357_p11  ;;  %p1075_p10 = por %p1074_p7, %p1073_p5 }
  0x1b   : > { %p1068_p0 = pnand %p1066_p13, %p1056_p12 }
  0x1d   : > { %p1069_p3 = pneg %p1068_p0 }
  0x1f   : > { %p1076_p9 = pnand %p1075_p10, %p1069_p3 }
  0x21   : > { %1079 = shalt.err (!%p1076_p9)
}
  0x22   : > { %s1268_s8 = smov 128   ;;  %s1269_s9 = smov 8  }
  0x23   : > { %s1615_s2 = sld [smem:[#allocation17_spill]]  ;;  %s1091_s12 = scalar_lea.vmem %s197_s6, 4096 }
  0x24   : > { %p1092_p1 = scmp.ne.s32.totalorder %s197_s6, %s1091_s12  ;;  %p1099_p2 = scmp.lt.s32.totalorder %s197_s6, %s197_s6 }
  0x25   : > { %p1100_p6 = scmp.lt.s32.totalorder %s1091_s12, %s1091_s12 }
  0x26   : > { %p1094_p13 = pnand %p1092_p1, %p1056_p12 }
  0x27   : > { %p1101_p5 = por %p1100_p6, %p1099_p2 }
  0x28   : > { %p1095_p0 = pneg %p1094_p13 }
  0x29   : > { %979 = dma.hbm_to_vmem [thread:$0]  (!%p1357_p11), %s1615_s2, 2048, %s184_s28, [#allocation6], %s1268_s8, %s1268_s8, %s1269_s9  }
  0x2a   : > { %p1102_p10 = pnand %p1101_p5, %p1095_p0 }
  0x2c   : > { %1105 = shalt.err (!%p1102_p10)
}
  0x2d   : > { %s1270_s13 = smov 256   ;;  %s1271_s14 = smov 16  }
  0x2e   : > { %s1616_s3 = sld [smem:[#allocation18_spill]]  ;;  %s1272_s17 = smov [#allocation10]  }
  0x2f   : > { %s210_s23 = sshll.u32 %s1272_s17, 4  ;;  %s1380_s27 = sadd.s32 1, %s1264_s21   ;;  %s211_s23 = int_to_ptr.vmem [resolvable:$true] %s210_s23 }
  0x30   : > { %s1117_s28 = scalar_lea.vmem %s211_s23, 128  ;;  %p1125_p3 = scmp.lt.s32.totalorder %s211_s23, %s211_s23 }
  0x31   : > { %p1118_p1 = scmp.ne.s32.totalorder %s211_s23, %s1117_s28  ;;  %p1126_p7 = scmp.lt.s32.totalorder %s1117_s28, %s1117_s28 }
  0x33   : > { %p1120_p2 = pnand %p1118_p1, %p1056_p12  ;;  %p1127_p9 = por %p1126_p7, %p1125_p3 }
  0x34   : > { %982 = dma.hbm_to_vmem [thread:$0]  (!%p1357_p11), %s1616_s3, 4096, %s197_s6, [#allocation9], %s1270_s13, %s1270_s13, %s1271_s14  }
  0x35   : > { %p1121_p6 = pneg %p1120_p2 }
  0x37   : > { %p1128_p13 = pnand %p1127_p9, %p1121_p6 }
  0x39   : > { %1131 = shalt.err (!%p1128_p13)
}
  0x3a   : > { %985 = dma.hbm_to_vmem [thread:$0]  (!%p1357_p11), %s1603_s4, 128, %s211_s23, [#allocation9]  }
  0x3b   : > { %s29_s7 = ssub.s32 %s1264_s21, %s1380_s27  ;;  %s32_s8 = sadd.s32 1, %s1260_s20 }
  0x3c   : > { %p30_p12 = scmp.eq.s32.totalorder %s29_s7, 0  ;;  %p39_p0 = scmp.ne.s32.totalorder %s1260_s20, %s1256_s19 }
  0x3d   : > { %p40_p5 = scmp.eq.s32.totalorder %s1264_s21, 0  ;;  %p1000_p10 = scmp.lt.s32.totalorder %s1264_s21, 2 }
  0x3e   : > { %s1398_s29 = scalar_select %p30_p12, %s1260_s20, %s32_s8  }
  0x3f   : > { %p41_p1 = por %p40_p5, %p39_p0  ;;  %p1617_p2 = scmp.eq.s32.totalorder %s1329_s22, 1 }
  0x40   : > { %s221_s10 = sand.u32 1, %s1260_s20   ;;  %s788_s11 = sshll.u32 %s1264_s21, 7 }
  0x41   : > { %p1402_p6 = por %p1617_p2, %p39_p0  ;;  %s1408_s12 = sshll.u32 %s221_s10, 3 }
  0x42   : > { %s1413_s15 = scalar_lea.hbm %s1599_s0, %s788_s11  ;;  %s225_s16 = scalar_lea.vmem [#allocation2], %s1408_s12 }
  0x43   : > { %s1618_s9 = scalar_select %p1402_p6, 1, 0 }
  0x44   : > { %s232_s17 = sshll.u32 %s225_s16, 4  ;;  %p1416_p11 = pnand %p1000_p10, %p41_p1  ;;  %s233_s17 = int_to_ptr.vmem [resolvable:$true] %s232_s17 }
  0x45   : > { %s1423_s6 = scalar_lea.hbm %s1600_s1, %s788_s11  ;;  %s222_s7 = scalar_lea.sflag [#allocation3], %s221_s10 }
  0x46   : > { %s1132_s8 = scalar_lea.hbm %s1413_s15, 128  ;;  %p1134_p7 = pneg %p1416_p11 }
  0x47   : > { %p1133_p3 = scmp.ne.s32.totalorder %s1413_s15, %s1132_s8  ;;  %s1137_s16 = scalar_lea.hbm %s1599_s0, 256 }
  0x48   : > { %p1138_p12 = scmp.lt.s32.totalorder %s1413_s15, %s1599_s0  ;;  %p1139_p0 = scmp.lt.s32.totalorder %s1137_s16, %s1132_s8 }
  0x49   : > { %p1135_p9 = pnand %p1134_p7, %p1133_p3 }
  0x4a   : > { %p1140_p5 = por %p1139_p0, %p1138_p12 }
  0x4b   : > { %p1136_p13 = pneg %p1135_p9 }
  0x4d   : > { %p1141_p10 = pnand %p1140_p5, %p1136_p13 }
  0x4f   : > { %1144 = shalt.err (!%p1141_p10)
}
  0x50   : > { %s1145_s10 = scalar_lea.vmem %s233_s17, 128  ;;  %s1273_s11 = smov [#allocation2]  }
  0x51   : > { %p1146_p1 = scmp.ne.s32.totalorder %s233_s17, %s1145_s10  ;;  %s1150_s28 = sshll.u32 %s1273_s11, 4  ;;  %s1151_s28 = int_to_ptr.vmem [resolvable:$false] %s1150_s28 }
  0x52   : > { %s1152_s30 = scalar_lea.vmem %s1151_s28, 256  ;;  %p1153_p9 = scmp.lt.s32.totalorder %s233_s17, %s1151_s28 }
  0x53   : > { %p1148_p2 = pnand %p1146_p1, %p1134_p7  ;;  %p1154_p6 = scmp.lt.s32.totalorder %s1152_s30, %s1145_s10 }
  0x55   : > { %p1149_p3 = pneg %p1148_p2  ;;  %p1155_p4 = por %p1154_p6, %p1153_p9 }
  0x57   : > { %p1156_p8 = pnand %p1155_p4, %p1149_p3 }
  0x59   : > { %1159 = shalt.err (!%p1156_p8)
}
  0x5a   : > { %989 = dma.hbm_to_vmem [thread:$0]  (!%p1416_p11), %s1413_s15, 128, %s233_s17, %s222_s7  }
  0x5b   : > { %s239_s2 = sand.u32 1, %s1264_s21   ;;  %s243_s3 = scalar_lea.vmem [#allocation5], %s1408_s12 }
  0x5c   : > { %s250_s8 = sshll.u32 %s243_s3, 4  ;;  %s240_s13 = scalar_lea.sflag [#allocation6], %s239_s2  ;;  %s251_s8 = int_to_ptr.vmem [resolvable:$true] %s250_s8 }
  0x5d   : > { %s1160_s14 = scalar_lea.hbm %s1423_s6, 128  ;;  %s1165_s11 = scalar_lea.hbm %s1600_s1, 256 }
  0x5e   : > { %p1161_p13 = scmp.ne.s32.totalorder %s1423_s6, %s1160_s14  ;;  %p1166_p6 = scmp.lt.s32.totalorder %s1423_s6, %s1600_s1 }
  0x5f   : > { %p1167_p12 = scmp.lt.s32.totalorder %s1165_s11, %s1160_s14 }
  0x60   : > { %p1163_p4 = pnand %p1161_p13, %p1134_p7 }
  0x61   : > { %p1168_p0 = por %p1167_p12, %p1166_p6 }
  0x62   : > { %p1164_p8 = pneg %p1163_p4 }
  0x64   : > { %p1169_p5 = pnand %p1168_p0, %p1164_p8 }
  0x66   : > { %1172 = shalt.err (!%p1169_p5)
}
  0x67   : > { %s1173_s12 = scalar_lea.vmem %s251_s8, 128  ;;  %s1274_s15 = smov [#allocation5]  }
  0x68   : > { %p1174_p10 = scmp.ne.s32.totalorder %s251_s8, %s1173_s12  ;;  %s1178_s17 = sshll.u32 %s1274_s15, 4  ;;  %s1179_s17 = int_to_ptr.vmem [resolvable:$false] %s1178_s17 }
  0x69   : > { %s1180_s7 = scalar_lea.vmem %s1179_s17, 256  ;;  %p1181_p3 = scmp.lt.s32.totalorder %s251_s8, %s1179_s17 }
  0x6a   : > { %p1176_p1 = pnand %p1174_p10, %p1134_p7  ;;  %p1182_p9 = scmp.lt.s32.totalorder %s1180_s7, %s1173_s12 }
  0x6c   : > { %p1177_p2 = pneg %p1176_p1  ;;  %p1183_p13 = por %p1182_p9, %p1181_p3 }
  0x6e   : > { %p1184_p4 = pnand %p1183_p13, %p1177_p2 }
  0x70   : > { %1187 = shalt.err (!%p1184_p4)
}
  0x71   : > { %992 = dma.hbm_to_vmem [thread:$0]  (!%p1416_p11), %s1423_s6, 128, %s251_s8, %s240_s13  }
  0x72   : > { %p1620_p8 = scmp.ne.s32.totalorder %s1613_s26, 0 }
  0x73   : > { %s1468_s2 = sand.u32 (!%p1620_p8), 1, %s1256_s19   ;;  %p1621_p7 = scmp.ne.s32.totalorder (!%p1620_p8), %s1611_s24, 0 }
  0x74   : > { %259 = sbr.rel (%p1620_p8) target bundleno = 899 (0x383), region = 40  ;;  %s1471_s3 = sshll.u32 (!%p1620_p8), %s1468_s2, 3 }
  0x75   : > { %s262_s14 = scalar_lea.sflag (!%p1620_p8), [#allocation3], %s1468_s2  ;;  %s265_s16 = scalar_lea.vmem (!%p1620_p8), [#allocation2], %s1471_s3 }
  0x79   : > { %1231 = dma.done.wait (%p1621_p7), %s262_s14, 128  }
  0x7a   : > { %1233 = vsyncadd (%p1621_p7), %s262_s14, 4294967168  ;;  %s270_s26 = sand.u32 1, %s1329_s22   ;;  %s274_s6 = scalar_lea.vmem [#allocation5], %s1471_s3 }
  0x7b   : > { %s271_s23 = scalar_lea.sflag [#allocation6], %s270_s26 }
  0x7c   : > { %1235 = dma.done.wait (%p1621_p7), %s271_s23, 128  }
  0x7d   : > { %1237 = vsyncadd (%p1621_p7), %s271_s23, 4294967168  ;;  %p1622_p11 = scmp.eq.s32.totalorder %s1329_s22, 0 }
  0x7f   : > { %1239 = dma.done.wait (%p1622_p11), [#allocation6], 2048   ;;  %p1623_p6 = pmov %p1622_p11 }
  0x81   : > { %1241 = vsyncadd (%p1623_p6), [#allocation6], 4294965248  ;;  %p1624_p12 = pmov %p1623_p6 }
  0x82   : > { %p1625_p0 = pmov %p1623_p6 }
  0x83   : > { %1243 = dma.done.wait (%p1624_p12), [#allocation9], 4224  }
  0x84   : > { %1245 = vsyncadd (%p1625_p0), [#allocation9], 4294963072  ;;  %v1275_v0 = vmov 0.0   ;;  %vm1276_vm0 = vmmov 0   ;;  %v352_v1 = vld [vmem:[#allocation8 + $0xf0] sm:$0xff]  ;;  %v336_v2 = vld [vmem:[#allocation7 + $0x78] sm:$0xff]  ;;  %v493_v55 = vlaneseq }
  0x85   : > { %853 = vmatprep.subr.mxu0 %v1275_v0  ;;  %888 = vmatprep.subr.mxu1 %v1275_v0  ;;  %v351_v3 = vld [vmem:[#allocation8 + $0xe0] sm:$0xff]  ;;  %v335_v4 = vld [vmem:[#allocation7 + $0x70] sm:$0xff]  ;;  %v334_v6 = vld [vmem:[#allocation7 + $0x68] sm:$0xff]  ;;  %s799_s24 = sshll.u32 %s1329_s22, 7  ;;  %s317_s8 = scalar_lea.vmem [#allocation11], %s1471_s3 }
  0x86   : > { %885 = vmatprep.mubr.msk.f32.mxu0 %vm1276_vm0, %v1275_v0  ;;  %920 = vmatprep.mubr.msk.f32.mxu1 %vm1276_vm0, %v1275_v0  ;;  %v350_v5 = vld [vmem:[#allocation8 + $0xd0] sm:$0xff]  ;;  %v349_v7 = vld [vmem:[#allocation8 + $0xc0] sm:$0xff]  ;;  %v332_v10 = vld [vmem:[#allocation7 + $0x58] sm:$0xff]  ;;  %v1554_v56 = vshrl.u32 %v493_v55, 7  ;;  %s660_s13 = sshll.u32 %s317_s8, 4  ;;  %s658_s28 = scalar_lea.hbm %s1604_s5, %s799_s24  ;;  %s661_s13 = int_to_ptr.vmem [resolvable:$true] %s660_s13 }
  0x87   : > { %854 = vmatpush3.msra.mxu0 %v352_v1  ;;  %889 = vmatpush3.msra.mxu1 %v336_v2  ;;  %v333_v8 = vld [vmem:[#allocation7 + $0x60] sm:$0xff]  ;;  %v348_v9 = vld [vmem:[#allocation8 + $0xb0] sm:$0xff]  ;;  %v330_v14 = vld [vmem:[#allocation7 + $0x48] sm:$0xff]  ;;  %s647_s30 = scalar_lea.sflag [#allocation4], %s1468_s2  ;;  %s1188_s12 = scalar_lea.vmem %s661_s13, 128 }
  0x88   : > { %855 = vmatprep.subr.mxu0 %v1275_v0  ;;  %890 = vmatprep.subr.mxu1 %v1275_v0  ;;  %v347_v11 = vld [vmem:[#allocation8 + $0xa0] sm:$0xff]  ;;  %v331_v12 = vld [vmem:[#allocation7 + $0x50] sm:$0xff]  ;;  %v328_v18 = vld [vmem:[#allocation7 + $0x38] sm:$0xff]  ;;  %v495_v57 = vsub.s32 0, %v1554_v56  ;;  %v517_v61 = vsub.s32 1, %v1554_v56  ;;  %p1189_p5 = scmp.ne.s32.totalorder %s661_s13, %s1188_s12  ;;  %p1626_p10 = scmp.ne.s32.totalorder %s1618_s9, 0 }
  0x89   : > { %856 = vmatpush3.msra.mxu0 %v351_v3  ;;  %891 = vmatpush3.msra.mxu1 %v335_v4  ;;  %v346_v13 = vld [vmem:[#allocation8 + $0x90] sm:$0xff]  ;;  %v345_v15 = vld [vmem:[#allocation8 + $0x80] sm:$0xff]  ;;  %v326_v22 = vld [vmem:[#allocation7 + $0x28] sm:$0xff]  ;;  %s1277_s15 = smov [#allocation11]  }
  0x8a   : > { %857 = vmatprep.subr.mxu0 %v1275_v0  ;;  %892 = vmatprep.subr.mxu1 %v1275_v0  ;;  %v329_v16 = vld [vmem:[#allocation7 + $0x40] sm:$0xff]  ;;  %v344_v17 = vld [vmem:[#allocation8 + $0x70] sm:$0xff]  ;;  %v324_v26 = vld [vmem:[#allocation7 + $0x18] sm:$0xff]  ;;  %p1190_p1 = pnand %p1189_p5, %p1626_p10  ;;  %s1192_s17 = sshll.u32 %s1277_s15, 4  ;;  %s1193_s17 = int_to_ptr.vmem [resolvable:$false] %s1192_s17 }
  0x8b   : > { %858 = vmatpush3.msra.mxu0 %v350_v5  ;;  %893 = vmatpush3.msra.mxu1 %v334_v6  ;;  %v343_v19 = vld [vmem:[#allocation8 + $0x60] sm:$0xff]  ;;  %v327_v20 = vld [vmem:[#allocation7 + $0x30] sm:$0xff]  ;;  %v322_v30 = vld [vmem:[#allocation7 + $0x8] sm:$0xff]  ;;  %s1194_s22 = scalar_lea.vmem %s1193_s17, 256  ;;  %p1195_p3 = scmp.lt.s32.totalorder %s661_s13, %s1193_s17 }
  0x8c   : > { %859 = vmatprep.subr.mxu0 %v1275_v0  ;;  %894 = vmatprep.subr.mxu1 %v1275_v0  ;;  %v342_v21 = vld [vmem:[#allocation8 + $0x50] sm:$0xff]  ;;  %v341_v23 = vld [vmem:[#allocation8 + $0x40] sm:$0xff]  ;;  %v514_v35 = vld [vmem:[#allocation8 + $0xf8] sm:$0xff]  ;;  %p1191_p2 = pneg %p1190_p1  ;;  %p1196_p9 = scmp.lt.s32.totalorder %s1194_s22, %s1188_s12 }
  0x8d   : > { %860 = vmatpush3.msra.mxu0 %v349_v7  ;;  %895 = vmatpush3.msra.mxu1 %v333_v8  ;;  %v325_v24 = vld [vmem:[#allocation7 + $0x20] sm:$0xff]  ;;  %v340_v25 = vld [vmem:[#allocation8 + $0x30] sm:$0xff]  ;;  %v513_v36 = vld [vmem:[#allocation8 + $0xe8] sm:$0xff] }
  0x8e   : > { %861 = vmatprep.subr.mxu0 %v1275_v0  ;;  %896 = vmatprep.subr.mxu1 %v1275_v0  ;;  %v339_v27 = vld [vmem:[#allocation8 + $0x20] sm:$0xff]  ;;  %v323_v28 = vld [vmem:[#allocation7 + $0x10] sm:$0xff]  ;;  %v512_v37 = vld [vmem:[#allocation8 + $0xd8] sm:$0xff]  ;;  %p1197_p13 = por %p1196_p9, %p1195_p3 }
  0x8f   : > { %862 = vmatpush3.msra.mxu0 %v348_v9  ;;  %897 = vmatpush3.msra.mxu1 %v332_v10  ;;  %v338_v29 = vld [vmem:[#allocation8 + $0x10] sm:$0xff]  ;;  %v337_v31 = vld [vmem:[#allocation8] sm:$0xff]  ;;  %v511_v38 = vld [vmem:[#allocation8 + $0xc8] sm:$0xff] }
  0x90   : > { %863 = vmatprep.subr.mxu0 %v1275_v0  ;;  %898 = vmatprep.subr.mxu1 %v1275_v0  ;;  %v321_v32 = vld [vmem:[#allocation7] sm:$0xff]  ;;  %v319_v33 = vld [vmem:[%s274_s6] sm:$0xff]  ;;  %v509_v40 = vld [vmem:[#allocation8 + $0xa8] sm:$0xff]  ;;  %p1198_p4 = pnand %p1197_p13, %p1191_p2 }
  0x91   : > { %864 = vmatpush3.msra.mxu0 %v347_v11  ;;  %899 = vmatpush3.msra.mxu1 %v331_v12  ;;  %v1533_v34 = vld [vmem:[%s265_s16] sm:$0xff]  ;;  %v510_v39 = vld [vmem:[#allocation8 + $0xb8] sm:$0xff] }
  0x92   : > { %865 = vmatprep.subr.mxu0 %v1275_v0  ;;  %900 = vmatprep.subr.mxu1 %v1275_v0  ;;  %v508_v41 = vld [vmem:[#allocation8 + $0x98] sm:$0xff]  ;;  %v507_v42 = vld [vmem:[#allocation8 + $0x88] sm:$0xff]  ;;  %v320_v58 = vld [vmem:[#allocation10] sm:$0xff]  ;;  %v590_v6 = vmul.f32 %v1533_v34, %v1533_v34 }
  0x93   : > { %866 = vmatpush3.msra.mxu0 %v346_v13  ;;  %901 = vmatpush3.msra.mxu1 %v330_v14  ;;  %v506_v43 = vld [vmem:[#allocation8 + $0x78] sm:$0xff]  ;;  %v505_v44 = vld [vmem:[#allocation8 + $0x68] sm:$0xff]  ;;  %v496_v60 = vrot.slane %v320_v58, %v495_v57  ;;  %v518_v63 = vrot.slane %v320_v58, %v517_v61 }
  0x94   : > { %867 = vmatprep.subr.mxu0 %v1275_v0  ;;  %902 = vmatprep.subr.mxu1 %v1275_v0  ;;  %v504_v45 = vld [vmem:[#allocation8 + $0x58] sm:$0xff]  ;;  %v503_v46 = vld [vmem:[#allocation8 + $0x48] sm:$0xff] }
  0x95   : > { %868 = vmatpush3.msra.mxu0 %v345_v15  ;;  %903 = vmatpush3.msra.mxu1 %v329_v16  ;;  %v502_v47 = vld [vmem:[#allocation8 + $0x38] sm:$0xff]  ;;  %v501_v48 = vld [vmem:[#allocation8 + $0x28] sm:$0xff] }
  0x96   : > { %869 = vmatprep.subr.mxu0 %v1275_v0  ;;  %904 = vmatprep.subr.mxu1 %v1275_v0  ;;  %v500_v49 = vld [vmem:[#allocation8 + $0x18] sm:$0xff]  ;;  %v499_v50 = vld [vmem:[#allocation8 + $0x8] sm:$0xff] }
  0x97   : > { %870 = vmatpush3.msra.mxu0 %v344_v17  ;;  %905 = vmatpush3.msra.mxu1 %v328_v18 }
  0x98   : > { %871 = vmatprep.subr.mxu0 %v1275_v0  ;;  %906 = vmatprep.subr.mxu1 %v1275_v0 }
  0x99   : > { %872 = vmatpush3.msra.mxu0 %v343_v19  ;;  %907 = vmatpush3.msra.mxu1 %v327_v20 }
  0x9a   : > { %873 = vmatprep.subr.mxu0 %v1275_v0  ;;  %908 = vmatprep.subr.mxu1 %v1275_v0 }
  0x9b   : > { %874 = vmatpush3.msra.mxu0 %v342_v21  ;;  %909 = vmatpush3.msra.mxu1 %v326_v22 }
  0x9c   : > { %875 = vmatprep.subr.mxu0 %v1275_v0  ;;  %910 = vmatprep.subr.mxu1 %v1275_v0 }
  0x9d   : > { %876 = vmatpush3.msra.mxu0 %v341_v23  ;;  %911 = vmatpush3.msra.mxu1 %v325_v24 }
  0x9e   : > { %877 = vmatprep.subr.mxu0 %v1275_v0  ;;  %912 = vmatprep.subr.mxu1 %v1275_v0 }
  0x9f   : > { %878 = vmatpush3.msra.mxu0 %v340_v25  ;;  %913 = vmatpush3.msra.mxu1 %v324_v26  ;;  %v623_v26 = vand.u32 127, %v493_v55 }
  0xa0   : > { %879 = vmatprep.subr.mxu0 %v1275_v0  ;;  %914 = vmatprep.subr.mxu1 %v1275_v0 }
  0xa1   : > { %880 = vmatpush3.msra.mxu0 %v339_v27  ;;  %915 = vmatpush3.msra.mxu1 %v323_v28  ;;  %vm624_vm6 = vcmp.lt.s32.totalorder %v623_v26, 32 }
  0xa2   : > { %881 = vmatprep.subr.mxu0 %v1275_v0  ;;  %916 = vmatprep.subr.mxu1 %v1275_v0 }
  0xa3   : > { %882 = vmatpush3.msra.mxu0 %v338_v29  ;;  %917 = vmatpush3.msra.mxu1 %v322_v30 }
  0xa4   : > { %883 = vmatprep.subr.mxu0 %v1275_v0  ;;  %918 = vmatprep.subr.mxu1 %v1275_v0 }
  0xa5   : > { %884 = vmatpush3.msra.mxu0 %v337_v31  ;;  %919 = vmatpush3.msra.mxu1 %v321_v32 }
  0xa6   : > { %886 = vmatmul.mubr.f32.vlgmr.msra.gmra.mxu0 %v319_v33  ;;  %923 = vmatprep.subr.mxu0 %v1275_v0 }
  0xa7   : > { %921 = vmatmul.mubr.f32.vlgmr.msra.gmra.mxu1 %v1533_v34  ;;  %924 = vmatpush3.msra.mxu0 %v514_v35 }
  0xa8   : > { %925 = vmatprep.subr.mxu0 %v1275_v0  ;;  %955 = vmatprep.mubr.msk.f32.mxu0 %vm1276_vm0, %v1275_v0 }
  0xa9   : > { %926 = vmatpush3.msra.mxu0 %v513_v36  ;;  %v637_v36 = vsub.s32 2, %v1554_v56 }
  0xaa   : > { %927 = vmatprep.subr.mxu0 %v1275_v0 }
  0xab   : > { %928 = vmatpush3.msra.mxu0 %v512_v37  ;;  %v638_v37 = vrot.slane %v320_v58, %v637_v36 }
  0xac   : > { %929 = vmatprep.subr.mxu0 %v1275_v0 }
  0xad   : > { %930 = vmatpush3.msra.mxu0 %v511_v38 }
  0xae   : > { %931 = vmatprep.subr.mxu0 %v1275_v0 }
  0xaf   : > { %932 = vmatpush3.msra.mxu0 %v510_v39 }
  0xb0   : > { %933 = vmatprep.subr.mxu0 %v1275_v0 }
  0xb1   : > { %934 = vmatpush3.msra.mxu0 %v509_v40 }
  0xb2   : > { %935 = vmatprep.subr.mxu0 %v1275_v0 }
  0xb3   : > { %936 = vmatpush3.msra.mxu0 %v508_v41 }
  0xb4   : > { %937 = vmatprep.subr.mxu0 %v1275_v0 }
  0xb5   : > { %938 = vmatpush3.msra.mxu0 %v507_v42 }
  0xb6   : > { %939 = vmatprep.subr.mxu0 %v1275_v0 }
  0xb7   : > { %940 = vmatpush3.msra.mxu0 %v506_v43 }
  0xb8   : > { %941 = vmatprep.subr.mxu0 %v1275_v0 }
  0xb9   : > { %942 = vmatpush3.msra.mxu0 %v505_v44 }
  0xba   : > { %943 = vmatprep.subr.mxu0 %v1275_v0 }
  0xbb   : > { %944 = vmatpush3.msra.mxu0 %v504_v45 }
  0xbc   : > { %945 = vmatprep.subr.mxu0 %v1275_v0 }
  0xbd   : > { %946 = vmatpush3.msra.mxu0 %v503_v46 }
  0xbe   : > { %947 = vmatprep.subr.mxu0 %v1275_v0 }
  0xbf   : > { %948 = vmatpush3.msra.mxu0 %v502_v47 }
  0xc0   : > { %949 = vmatprep.subr.mxu0 %v1275_v0 }
  0xc1   : > { %950 = vmatpush3.msra.mxu0 %v501_v48 }
  0xc2   : > { %951 = vmatprep.subr.mxu0 %v1275_v0 }
  0xc3   : > { %952 = vmatpush3.msra.mxu0 %v500_v49 }
  0xc4   : > { %953 = vmatprep.subr.mxu0 %v1275_v0 }
  0xc5   : > { %954 = vmatpush3.msra.mxu0 %v499_v50 }
  0xc6   : > { %956 = vmatmul.mubr.f32.vlgmr.msra.gmra.mxu0 %v319_v33 }
 0x166   : > { %v419_v51 = vpop.f32.mrf.mxu0 }
 0x167   : > { %v489_v52 = vpop.f32.mrf.mxu1 }
 0x168   : > { %v887_v53 = vpop.f32.mrf.mxu0  ;;  %v490_v59 = vadd.f32 %v489_v52, %v419_v51 }
 0x169   : > { %v922_v54 = vpop.f32.mrf.mxu1 }
 0x16a   : > { %v497_v62 = vadd.f32 %v496_v60, %v490_v59 }
 0x16c   : > { %v498_v0 = vmax.f32 %v497_v62, 0.0 }
 0x186   : > { %v585_v1 = vpop.f32.mrf.mxu0 }
 0x187   : > { %v586_v2 = vadd.f32 %v585_v1, %v518_v63 }
 0x188   : > { %v957_v3 = vpop.f32.mrf.mxu0 }
 0x189   : > { %v589_v4 = vmul.f32 %v586_v2, %v498_v0 }
 0x18b   : > { %v600_v5 = vmul.f32 %v589_v4, %v589_v4 }
 0x18d   : > { %601 = vadd.xlane.f32.xlu0 %v600_v5 }
 0x191   : > { %591 = vadd.xlane.f32.xlu0 %v590_v6 }
 0x216   : > { %v602_v7 = vpop.xlane.xlu0 %601 }
 0x217   : > { %1046 = vrsqrt.f32 %v602_v7  ;;  %vm605_vm1 = vcmp.eq.f32.partialorder %v602_v7, inf  ;;  %v608_v11 = vand.u32 2147483648, %v602_v7  ;;  %vm607_vm2 = vcmp.eq.f32.partialorder %v602_v7, 0.0 }
 0x21a   : > { %v592_v8 = vpop.xlane.xlu0 %591 }
 0x21b   : > { %1048 = vrsqrt.f32 %v592_v8  ;;  %vm595_vm4 = vcmp.eq.f32.partialorder %v592_v8, inf  ;;  %v598_v18 = vand.u32 2147483648, %v592_v8  ;;  %vm597_vm5 = vcmp.eq.f32.partialorder %v592_v8, 0.0 }
 0x224   : > { %v1047_v9 = vpop.eup %1046 }
 0x225   : > { %v604_v10 = vmul.f32 %v1047_v9, %v602_v7 }
 0x227   : > { %v606_v12 = vsel %vm605_vm1, %v602_v7, %v604_v10 }
 0x228   : > { %v609_v13 = vsel %vm607_vm2, %v608_v11, %v606_v12  ;;  %v1049_v16 = vpop.eup %1048 }
 0x229   : > { %vm610_vm3 = vcmp.eq.f32.partialorder %v609_v13, 0.0  ;;  %v594_v17 = vmul.f32 %v1049_v16, %v592_v8 }
 0x22a   : > { %v611_v14 = vsel %vm610_vm3, 1.0, %v609_v13 }
 0x22b   : > { %v612_v15 = vadd.f32 1e-06, %v611_v14  ;;  %v596_v19 = vsel %vm595_vm4, %v592_v8, %v594_v17 }
 0x22c   : > { %v599_v21 = vsel %vm597_vm5, %v598_v18, %v596_v19 }
 0x22d   : > { %1050 = vrcp.f32 %v612_v15 }
 0x23a   : > { %v1051_v20 = vpop.eup %1050 }
 0x23b   : > { %v614_v22 = vmul.f32 %v1051_v20, %v599_v21 }
 0x23d   : > { %v615_v23 = vmin.f32 %v614_v22, 1.0 }
 0x23f   : > { %v616_v24 = vmul.f32 %v615_v23, %v589_v4 }
 0x241   : > { %v617_v25 = vadd.f32 %v616_v24, %v1533_v34  ;;  %v642_v34 = vsub.s32 3, %v1554_v56 }
 0x243   : > { %618 = vadd.xlane.f32.xlu1 %v617_v25  ;;  %v643_v40 = vrot.slane %v320_v58, %v642_v34 }
 0x2cc   : > { %v619_v27 = vpop.xlane.xlu1 %618 }
 0x2cd   : > { %v620_v28 = vmul.f32 0.03125, %v619_v27 }
 0x2cf   : > { %v621_v29 = vsub.f32 %v617_v25, %v620_v28 }
 0x2d1   : > { %v627_v30 = vsel %vm624_vm6, %v621_v29, 0.0 }
 0x2d2   : > { %v628_v31 = vmul.f32 %v627_v30, %v627_v30 }
 0x2d4   : > { %629 = vadd.xlane.f32.xlu1 %v628_v31 }
 0x35d   : > { %v630_v32 = vpop.xlane.xlu1 %629 }
 0x35e   : > { %v631_v33 = vmul.f32 0.03125, %v630_v32 }
 0x360   : > { %v632_v35 = vadd.f32 1e-05, %v631_v33 }
 0x362   : > { %1052 = vrsqrt.f32 %v632_v35 }
 0x36f   : > { %v1053_v38 = vpop.eup %1052 }
 0x370   : > { %v634_v39 = vmul.f32 %v1053_v38, %v621_v29 }
 0x372   : > { %v639_v41 = vmul.f32 %v638_v37, %v634_v39 }
 0x374   : > { %v644_v42 = vadd.f32 %v643_v40, %v639_v41 }
 0x376   : > { %645 = vst [vmem:[%s317_s8] sm:$0xff] %v644_v42 }
 0x377   : > { %1201 = shalt.err (!%p1198_p4)
}
 0x378   : > { %s1202_s7 = scalar_lea.hbm %s658_s28, 128  ;;  %s1206_s14 = scalar_lea.hbm %s1604_s5, 256 }
 0x379   : > { %p1203_p8 = scmp.ne.s32.totalorder %s658_s28, %s1202_s7  ;;  %p1207_p6 = scmp.lt.s32.totalorder %s658_s28, %s1604_s5 }
 0x37a   : > { %p1208_p12 = scmp.lt.s32.totalorder %s1206_s14, %s1202_s7 }
 0x37b   : > { %p1204_p7 = pnand %p1203_p8, %p1626_p10 }
 0x37c   : > { %p1209_p0 = por %p1208_p12, %p1207_p6 }
 0x37d   : > { %p1205_p11 = pneg %p1204_p7 }
 0x37f   : > { %p1210_p5 = pnand %p1209_p0, %p1205_p11 }
 0x381   : > { %1213 = shalt.err (!%p1210_p5)
}
 0x382   : > { %974 = dma.vmem_to_hbm [thread:$0]  (%p1626_p10), %s661_s13, 128, %s658_s28, %s647_s30  }
 0x383 PF: > { %s672_s23 = sand.u32 1, %s1252_s18   ;;  %p1627_p1 = scmp.ne.s32.totalorder %s1612_s25, 0 }
 0x384   : > { %p1628_p2 = scmp.ge.s32.totalorder %s1264_s21, 2  ;;  %s673_s6 = scalar_lea.sflag [#allocation4], %s672_s23 }
 0x386   : > { %p994_p3 = pnand %p1628_p2, %p1627_p1 }
 0x388   : > { %p995_p9 = pneg %p994_p3 }
 0x38a   : > { %1247 = dma.done.wait (%p995_p9), %s673_s6, 128  }
 0x38b   : > { %1249 = vsyncadd (%p995_p9), %s673_s6, 4294967168  ;;  %p22_p13 = scmp.ge.s32.totalorder %s1380_s27, 4   ;;  %s1629_s18 = smov %s1256_s19 }
 0x38c   : > { %s1630_s19 = smov %s1260_s20  ;;  %s1631_s20 = smov %s1398_s29 }
 0x38d   : > { %s1632_s21 = smov %s1380_s27  ;;  %24 = sbr.rel (!%p22_p13) target bundleno = 11 (0xb), region = 110 }
 0x392   :  { %678 = vsyncpa [#allocation3], 1 }
 0x393   :  { %680 = vsyncpa [#allocation3 + $0x1], 1 }
 0x394   :  { %681 = vsyncpa [#allocation6], 1 }
 0x395   :  { %683 = vsyncpa [#allocation6 + $0x1], 1 }
 0x396   :  { %684 = vsyncpa [#allocation9], 1 }
 0x397   :  { %685 = vsyncpa [#allocation4], 1 }
 0x398   :  { %687 = vsyncpa [#allocation4 + $0x1], 1 }

</bundles_post_ra>
